<compile_context>
chip_gen: v5e
topology: v5e:2x2
jax: 0.10.0
libtpu: 0.0.40
codegen_flags: <defaults>
</compile_context>

<pallas_src>
import jax
import jax.numpy as jnp
from jax.experimental import pallas as pl
from jax.experimental.pallas import tpu as pltpu

WINDOW = 7           # F.avg_pool2d(image, 7, 1, window_size // 2, ...)
PAD = WINDOW // 2    # window_size=7 default -> padding 3


def _avg_pool_kernel(x_ref, inv_ref, o_ref, xw_ref, sh_ref):
    # x_ref / o_ref: (TB, H, W) blocks of planes (H on sublanes, W on lanes).
    # inv_ref: (1, H, W) float32 reciprocal-count map, VMEM-resident.
    # xw_ref:  (TB, H, W + 2*PAD) float32 scratch (W halo).
    # sh_ref:  (TB, H + 2*PAD, W) float32 scratch (H halo).
    tb, H, W = x_ref.shape

    # Re-zero only the halo lanes/rows each step (interior is overwritten below).
    zw = jnp.zeros((tb, H, PAD), jnp.float32)
    xw_ref[:, :, 0:PAD] = zw
    xw_ref[:, :, PAD + W:2 * PAD + W] = zw
    zh = jnp.zeros((tb, PAD, W), jnp.float32)
    sh_ref[:, 0:PAD, :] = zh
    sh_ref[:, PAD + H:2 * PAD + H, :] = zh

    # Copy the block into the W-haloed interior, accumulating in float32.
    xw_ref[:, :, PAD:PAD + W] = x_ref[...].astype(jnp.float32)

    # 7-tap sum along W (lane axis): static-offset reads; zero halo == zero pad.
    sw = xw_ref[:, :, 0:W]
    for d in range(1, WINDOW):
        sw = sw + xw_ref[:, :, d:d + W]

    # 7-tap sum along H (sublane axis) via the H-haloed scratch.
    sh_ref[:, PAD:PAD + H, :] = sw
    acc = sh_ref[:, 0:H, :]
    for d in range(1, WINDOW):
        acc = acc + sh_ref[:, d:d + H, :]

    # count_include_pad=False: multiply by the resident reciprocal counts
    # (broadcast along the leading plane axis is free) and cast once.
    o_ref[...] = (acc * inv_ref[...]).astype(o_ref.dtype)


def _round_up(x, m):
    return (x + m - 1) // m * m


def _vmem_budget_bytes():
    # Per-step working-set budget. 12 MiB fits v5e's 16 MiB scoped default and
    # sits well under v6e/v7x's 32 MiB default; on v7x-class chips (64 MiB
    # physical VMEM, half of v5e/v6e) tighten further.
    budget = 12 * 1024 * 1024
    try:
        info = pltpu.get_tpu_info()
        vmem = getattr(info, "vmem_capacity_bytes", None)
        if vmem is not None and vmem <= 64 * 1024 * 1024:
            budget = 8 * 1024 * 1024
    except Exception:
        pass
    return budget


def _choose_tb(B, H, W, itemsize):
    """Planes per grid step.

    Goals: (a) block big enough to amortize the ~0.35 us/step overhead,
    (b) 2x(in) + 2x(out) double-buffered blocks + the two f32 halo scratches
    fit the per-generation VMEM budget, (c) >=4 grid steps so the BlockSpec
    pipeline overlaps DMA with compute, (d) an even number of steps whenever
    possible so v7x's two TensorCores both get work under 'parallel'.
    """
    plane_io = H * W * itemsize                                        # in/out plane
    plane_f32 = _round_up(H + 2 * PAD, 8) * _round_up(W + 2 * PAD, 128) * 4
    per_plane = 4 * plane_io + 2 * plane_f32 + 2 * H * W * 4           # + live f32 temps
    max_tb = max(1, _vmem_budget_bytes() // per_plane)
    steps = max(pl.cdiv(B, max_tb), min(B, 4))
    if steps > 1 and steps % 2 == 1:
        steps += 1
    steps = min(steps, B)
    return pl.cdiv(B, steps)


def _inv_count_map(H, W):
    # Number of in-bounds taps per output pixel (count_include_pad=False),
    # kept in float32 independent of the input dtype.
    ih = jnp.arange(H, dtype=jnp.int32)
    iw = jnp.arange(W, dtype=jnp.int32)
    cnt_h = jnp.minimum(ih + PAD, H - 1) - jnp.maximum(ih - PAD, 0) + 1
    cnt_w = jnp.minimum(iw + PAD, W - 1) - jnp.maximum(iw - PAD, 0) + 1
    cnt = (cnt_h[:, None] * cnt_w[None, :]).astype(jnp.float32)
    return (1.0 / cnt).reshape(1, H, W)


@jax.jit
def average_forward(image):
    """Equivalent of AVERAGE().forward(image) for NCHW float input."""
    N, C, H, W = image.shape
    B = N * C
    x = image.reshape(B, H, W)            # view-only reshape, no HBM traffic
    inv_cnt = _inv_count_map(H, W)        # (1, H, W) float32, grid-invariant

    tb = _choose_tb(B, H, W, image.dtype.itemsize)
    grid = (pl.cdiv(B, tb),)
    # Ragged last block (B % tb != 0): OOB planes read undefined data and their
    # writes are dropped; safe because the op is elementwise along the plane axis.

    out = pl.pallas_call(
        _avg_pool_kernel,
        out_shape=jax.ShapeDtypeStruct((B, H, W), image.dtype),
        grid_spec=pltpu.PrefetchScalarGridSpec(
            num_scalar_prefetch=0,
            grid=grid,
            in_specs=[
                pl.BlockSpec((tb, H, W), lambda b: (b, 0, 0)),
                pl.BlockSpec((1, H, W), lambda b: (0, 0, 0)),   # resident inv map
            ],
            out_specs=pl.BlockSpec((tb, H, W), lambda b: (b, 0, 0)),
            scratch_shapes=[
                pltpu.VMEM((tb, H, W + 2 * PAD), jnp.float32),  # W-halo scratch
                pltpu.VMEM((tb, H + 2 * PAD, W), jnp.float32),  # H-halo scratch
            ],
        ),
        compiler_params=pltpu.CompilerParams(
            dimension_semantics=("parallel",),
            vmem_limit_bytes=32 * 1024 * 1024,
        ),
    )(x, inv_cnt)

    return out.reshape(N, C, H, W)


def _reference(image):
    # Independent pure-JAX reference: reduce_window sum / reduce_window count
    # (count_include_pad=False semantics, matching the PyTorch forward).
    pad_cfg = [(0, 0), (0, 0), (PAD, PAD), (PAD, PAD)]
    win = (1, 1, WINDOW, WINDOW)
    strides = (1, 1, 1, 1)
    s = jax.lax.reduce_window(image, 0.0, jax.lax.add, win, strides, pad_cfg)
    ones = jnp.ones_like(image)
    cnt = jax.lax.reduce_window(ones, 0.0, jax.lax.add, win, strides, pad_cfg)
    return s / cnt


if __name__ == "__main__":
    key = jax.random.PRNGKey(0)
    N, C, H, W = 2, 4, 16, 16
    image = jax.random.normal(key, (N, C, H, W), dtype=jnp.float32)

    out = average_forward(image)
    out = jax.block_until_ready(out)

    ref = _reference(image)
    assert out.shape == (N, C, H, W)
    assert jnp.allclose(out, ref, atol=1e-4, rtol=1e-4), "mismatch vs reference"

    print("KERNEL_OK")
</pallas_src>

<mosaic_0001>
module attributes {stable_mosaic.version = 11 : i64} {
  func.func @_avg_pool_kernel(%arg0: i32, %arg1: memref<2x16x16xf32, #tpu.memory_space<vmem>>, %arg2: memref<1x16x16xf32, #tpu.memory_space<vmem>>, %arg3: memref<2x16x16xf32, #tpu.memory_space<vmem>>, %arg4: memref<2x16x22xf32, #tpu.memory_space<vmem>>, %arg5: memref<2x22x16xf32, #tpu.memory_space<vmem>>) attributes {dimension_semantics = [#tpu.dimension_semantics<parallel>], iteration_bounds = array<i64: 4>, scalar_prefetch = 0 : i64, scratch_operands = 2 : i64, tpu.core_type = #tpu.core_type<tc>, window_params = [{transform_indices = @transform_0, window_bounds = array<i64: 2, 16, 16>}, {pipeline_mode = #tpu.pipeline_mode<synchronous>, transform_indices = @transform_1, window_bounds = array<i64: 1, 16, 16>}, {transform_indices = @transform_2, window_bounds = array<i64: 2, 16, 16>}]} {
    %cst = arith.constant 0.000000e+00 : f32
    %0 = vector.broadcast %cst : f32 to vector<2x16x3xf32>
    %c0 = arith.constant 0 : index
    %c0_0 = arith.constant 0 : index
    %c0_1 = arith.constant 0 : index
    %1 = vector.load %arg4[%c0, %c0_0, %c0_1] : memref<2x16x22xf32, #tpu.memory_space<vmem>>, vector<2x16x3xf32>
    tpu.vector_store %arg4[%c0, %c0_0, %c0_1], %0 {strides = array<i32>} : memref<2x16x22xf32, #tpu.memory_space<vmem>>, vector<2x16x3xf32>,
    %c0_2 = arith.constant 0 : index
    %c0_3 = arith.constant 0 : index
    %c19 = arith.constant 19 : index
    %2 = vector.load %arg4[%c0_2, %c0_3, %c19] : memref<2x16x22xf32, #tpu.memory_space<vmem>>, vector<2x16x3xf32>
    tpu.vector_store %arg4[%c0_2, %c0_3, %c19], %0 {strides = array<i32>} : memref<2x16x22xf32, #tpu.memory_space<vmem>>, vector<2x16x3xf32>,
    %cst_4 = arith.constant 0.000000e+00 : f32
    %3 = vector.broadcast %cst_4 : f32 to vector<2x3x16xf32>
    %c0_5 = arith.constant 0 : index
    %c0_6 = arith.constant 0 : index
    %c0_7 = arith.constant 0 : index
    %4 = vector.load %arg5[%c0_5, %c0_6, %c0_7] : memref<2x22x16xf32, #tpu.memory_space<vmem>>, vector<2x3x16xf32>
    tpu.vector_store %arg5[%c0_5, %c0_6, %c0_7], %3 {strides = array<i32>} : memref<2x22x16xf32, #tpu.memory_space<vmem>>, vector<2x3x16xf32>,
    %c0_8 = arith.constant 0 : index
    %c19_9 = arith.constant 19 : index
    %c0_10 = arith.constant 0 : index
    %5 = vector.load %arg5[%c0_8, %c19_9, %c0_10] : memref<2x22x16xf32, #tpu.memory_space<vmem>>, vector<2x3x16xf32>
    tpu.vector_store %arg5[%c0_8, %c19_9, %c0_10], %3 {strides = array<i32>} : memref<2x22x16xf32, #tpu.memory_space<vmem>>, vector<2x3x16xf32>,
    %c0_11 = arith.constant 0 : index
    %c0_12 = arith.constant 0 : index
    %c0_13 = arith.constant 0 : index
    %6 = vector.load %arg1[%c0_11, %c0_12, %c0_13] : memref<2x16x16xf32, #tpu.memory_space<vmem>>, vector<2x16x16xf32>
    %c0_14 = arith.constant 0 : index
    %c0_15 = arith.constant 0 : index
    %c3 = arith.constant 3 : index
    %7 = vector.load %arg4[%c0_14, %c0_15, %c3] : memref<2x16x22xf32, #tpu.memory_space<vmem>>, vector<2x16x16xf32>
    tpu.vector_store %arg4[%c0_14, %c0_15, %c3], %6 {strides = array<i32>} : memref<2x16x22xf32, #tpu.memory_space<vmem>>, vector<2x16x16xf32>,
    %c0_16 = arith.constant 0 : index
    %c0_17 = arith.constant 0 : index
    %c0_18 = arith.constant 0 : index
    %8 = vector.load %arg4[%c0_16, %c0_17, %c0_18] : memref<2x16x22xf32, #tpu.memory_space<vmem>>, vector<2x16x16xf32>
    %c0_19 = arith.constant 0 : index
    %c0_20 = arith.constant 0 : index
    %c1 = arith.constant 1 : index
    %9 = vector.load %arg4[%c0_19, %c0_20, %c1] : memref<2x16x22xf32, #tpu.memory_space<vmem>>, vector<2x16x16xf32>
    %10 = arith.addf %8, %9 : vector<2x16x16xf32>
    %c0_21 = arith.constant 0 : index
    %c0_22 = arith.constant 0 : index
    %c2 = arith.constant 2 : index
    %11 = vector.load %arg4[%c0_21, %c0_22, %c2] : memref<2x16x22xf32, #tpu.memory_space<vmem>>, vector<2x16x16xf32>
    %12 = arith.addf %10, %11 : vector<2x16x16xf32>
    %c0_23 = arith.constant 0 : index
    %c0_24 = arith.constant 0 : index
    %c3_25 = arith.constant 3 : index
    %13 = vector.load %arg4[%c0_23, %c0_24, %c3_25] : memref<2x16x22xf32, #tpu.memory_space<vmem>>, vector<2x16x16xf32>
    %14 = arith.addf %12, %13 : vector<2x16x16xf32>
    %c0_26 = arith.constant 0 : index
    %c0_27 = arith.constant 0 : index
    %c4 = arith.constant 4 : index
    %15 = vector.load %arg4[%c0_26, %c0_27, %c4] : memref<2x16x22xf32, #tpu.memory_space<vmem>>, vector<2x16x16xf32>
    %16 = arith.addf %14, %15 : vector<2x16x16xf32>
    %c0_28 = arith.constant 0 : index
    %c0_29 = arith.constant 0 : index
    %c5 = arith.constant 5 : index
    %17 = vector.load %arg4[%c0_28, %c0_29, %c5] : memref<2x16x22xf32, #tpu.memory_space<vmem>>, vector<2x16x16xf32>
    %18 = arith.addf %16, %17 : vector<2x16x16xf32>
    %c0_30 = arith.constant 0 : index
    %c0_31 = arith.constant 0 : index
    %c6 = arith.constant 6 : index
    %19 = vector.load %arg4[%c0_30, %c0_31, %c6] : memref<2x16x22xf32, #tpu.memory_space<vmem>>, vector<2x16x16xf32>
    %20 = arith.addf %18, %19 : vector<2x16x16xf32>
    %c0_32 = arith.constant 0 : index
    %c3_33 = arith.constant 3 : index
    %c0_34 = arith.constant 0 : index
    %21 = vector.load %arg5[%c0_32, %c3_33, %c0_34] : memref<2x22x16xf32, #tpu.memory_space<vmem>>, vector<2x16x16xf32>
    tpu.vector_store %arg5[%c0_32, %c3_33, %c0_34], %20 {strides = array<i32>} : memref<2x22x16xf32, #tpu.memory_space<vmem>>, vector<2x16x16xf32>,
    %c0_35 = arith.constant 0 : index
    %c0_36 = arith.constant 0 : index
    %c0_37 = arith.constant 0 : index
    %22 = vector.load %arg5[%c0_35, %c0_36, %c0_37] : memref<2x22x16xf32, #tpu.memory_space<vmem>>, vector<2x16x16xf32>
    %c0_38 = arith.constant 0 : index
    %c1_39 = arith.constant 1 : index
    %c0_40 = arith.constant 0 : index
    %23 = vector.load %arg5[%c0_38, %c1_39, %c0_40] : memref<2x22x16xf32, #tpu.memory_space<vmem>>, vector<2x16x16xf32>
    %24 = arith.addf %22, %23 : vector<2x16x16xf32>
    %c0_41 = arith.constant 0 : index
    %c2_42 = arith.constant 2 : index
    %c0_43 = arith.constant 0 : index
    %25 = vector.load %arg5[%c0_41, %c2_42, %c0_43] : memref<2x22x16xf32, #tpu.memory_space<vmem>>, vector<2x16x16xf32>
    %26 = arith.addf %24, %25 : vector<2x16x16xf32>
    %c0_44 = arith.constant 0 : index
    %c3_45 = arith.constant 3 : index
    %c0_46 = arith.constant 0 : index
    %27 = vector.load %arg5[%c0_44, %c3_45, %c0_46] : memref<2x22x16xf32, #tpu.memory_space<vmem>>, vector<2x16x16xf32>
    %28 = arith.addf %26, %27 : vector<2x16x16xf32>
    %c0_47 = arith.constant 0 : index
    %c4_48 = arith.constant 4 : index
    %c0_49 = arith.constant 0 : index
    %29 = vector.load %arg5[%c0_47, %c4_48, %c0_49] : memref<2x22x16xf32, #tpu.memory_space<vmem>>, vector<2x16x16xf32>
    %30 = arith.addf %28, %29 : vector<2x16x16xf32>
    %c0_50 = arith.constant 0 : index
    %c5_51 = arith.constant 5 : index
    %c0_52 = arith.constant 0 : index
    %31 = vector.load %arg5[%c0_50, %c5_51, %c0_52] : memref<2x22x16xf32, #tpu.memory_space<vmem>>, vector<2x16x16xf32>
    %32 = arith.addf %30, %31 : vector<2x16x16xf32>
    %c0_53 = arith.constant 0 : index
    %c6_54 = arith.constant 6 : index
    %c0_55 = arith.constant 0 : index
    %33 = vector.load %arg5[%c0_53, %c6_54, %c0_55] : memref<2x22x16xf32, #tpu.memory_space<vmem>>, vector<2x16x16xf32>
    %34 = arith.addf %32, %33 : vector<2x16x16xf32>
    %c0_56 = arith.constant 0 : index
    %c0_57 = arith.constant 0 : index
    %c0_58 = arith.constant 0 : index
    %35 = vector.load %arg2[%c0_56, %c0_57, %c0_58] : memref<1x16x16xf32, #tpu.memory_space<vmem>>, vector<1x16x16xf32>
    %36 = vector.broadcast %35 : vector<1x16x16xf32> to vector<2x16x16xf32>
    %37 = arith.mulf %34, %36 : vector<2x16x16xf32>
    %c0_59 = arith.constant 0 : index
    %c0_60 = arith.constant 0 : index
    %c0_61 = arith.constant 0 : index
    %38 = vector.load %arg3[%c0_59, %c0_60, %c0_61] : memref<2x16x16xf32, #tpu.memory_space<vmem>>, vector<2x16x16xf32>
    tpu.vector_store %arg3[%c0_59, %c0_60, %c0_61], %37 {strides = array<i32>} : memref<2x16x16xf32, #tpu.memory_space<vmem>>, vector<2x16x16xf32>,
    return
  }
  func.func @transform_0(%arg0: i32) -> (i32, i32, i32) {
    %c0_i32 = arith.constant 0 : i32
    %c0_i32_0 = arith.constant 0 : i32
    %c0_i32_1 = arith.constant 0 : i32
    return %arg0, %c0_i32, %c0_i32_0 : i32, i32, i32
  }
  func.func @transform_1(%arg0: i32) -> (i32, i32, i32) {
    %c0_i32 = arith.constant 0 : i32
    %c0_i32_0 = arith.constant 0 : i32
    %c0_i32_1 = arith.constant 0 : i32
    %c0_i32_2 = arith.constant 0 : i32
    return %c0_i32, %c0_i32_0, %c0_i32_1 : i32, i32, i32
  }
  func.func @transform_2(%arg0: i32) -> (i32, i32, i32) {
    %c0_i32 = arith.constant 0 : i32
    %c0_i32_0 = arith.constant 0 : i32
    %c0_i32_1 = arith.constant 0 : i32
    return %arg0, %c0_i32, %c0_i32_0 : i32, i32, i32
  }
}

</mosaic_0001>

<bundles_post_ra>
// kernel: average_forward.1
= control target key start
LH: loop header
LB: loop body
LE: loop exit
PB: predicated region body
PF: predicated region fallthrough
CT: control target
= control target key end

     0   :  { %7 = vsyncpa [#allocation5], 0  ;;  %s826_s0 = inlined_call_operand.hbm [shape: f32[8,16,16], index: 0, kind: input, shape index: {}]   ;;  %s827_s1 = inlined_call_operand.vmem [shape: f32[1,16,16], index: 1, kind: input, shape index: {}]   ;;  %s828_s2 = inlined_call_operand.hbm [shape: f32[8,16,16], index: 2, kind: output, shape index: {}]  }
   0x1   :  { %9 = vsyncpa [#allocation5 + $0x1], 0 }
   0x2   :  { %10 = vsyncpa [#allocation6], 0 }
   0x3   :  { %12 = vsyncpa [#allocation6 + $0x1], 0  ;;  %s671_s9 = smov 0   ;;  %s673_s10 = smov 0  }
   0x4   :  { %s675_s11 = smov 0   ;;  %s677_s12 = smov 0  }
   0x5 LB: > { %s692_s13 = sadd.s32 4294967295, %s642_s12   ;;  %s468_s14 = sadd.s32 4294967294, %s642_s12   ;;  %s642_s12 = sphi %s677_s12, %s837_s12   ;;  %s638_s11 = sphi %s675_s11, %s836_s11   ;;  %s634_s10 = sphi %s673_s10, %s835_s10   ;;  %s630_s9 = sphi %s671_s9, %s834_s9  }
   0x6   : > { %s696_s15 = sadd.s32 1, %s642_s12   ;;  %s25_s16 = sadd.s32 1, %s638_s11 }
   0x7   : > { %s22_s17 = ssub.s32 %s642_s12, %s696_s15  ;;  %p32_p0 = scmp.ne.s32.totalorder %s638_s11, %s634_s10 }
   0x8   : > { %p23_p1 = scmp.eq.s32.totalorder %s22_s17, 0  ;;  %p33_p2 = scmp.eq.s32.totalorder %s642_s12, 0 }
   0x9   : > { %p38_p3 = scmp.ne.s32.totalorder %s634_s10, %s630_s9  ;;  %p39_p4 = scmp.eq.s32.totalorder %s692_s13, 0 }
   0xa   : > { %s708_s18 = scalar_select %p23_p1, %s638_s11, %s25_s16  }
   0xb   : > { %p710_p5 = por %p33_p2, %p32_p0  ;;  %p714_p6 = por %p39_p4, %p38_p3 }
   0xc   : > { %p83_p7 = scmp.eq.s32.totalorder %s692_s13, 3  ;;  %p89_p8 = scmp.eq.s32.totalorder %s468_s14, 3 }
   0xd   : > { %p500_p9 = scmp.lt.s32.totalorder %s642_s12, 4  ;;  %s112_s23 = sand.u32 1, %s638_s11  }
   0xe   : > { %p720_p10 = por %p83_p7, %p32_p0  ;;  %p724_p11 = por %p89_p8, %p38_p3 }
   0xf   : > { %s485_s24 = sshll.u32 %s642_s12, 5  ;;  %s471_s25 = sshll.u32 %s112_s23, 5 }
  0x10   : > { %s122_s28 = scalar_lea.hbm %s826_s0, %s485_s24  ;;  %s116_s30 = scalar_lea.vmem [#allocation4], %s471_s25 }
  0x11   : > { %s123_s29 = sshll.u32 %s122_s28, 4  ;;  %s125_s3 = sshll.u32 %s116_s30, 4  ;;  %s124_s29 = int_to_ptr.hbm [resolvable:$true] %s123_s29  ;;  %s126_s3 = int_to_ptr.vmem [resolvable:$true] %s125_s3 }
  0x12   : > { %p735_p12 = pnand %p500_p9, %p710_p5  ;;  %p475_p13 = scmp.ge.s32.totalorder %s642_s12, 1 }
  0x13   : > { %p133_p0 = scmp.lt.s32.totalorder %s642_s12, 5  ;;  %s113_s5 = scalar_lea.sflag [#allocation5], %s112_s23 }
  0x14   : > { %s546_s6 = sshra.s32 %s124_s29, 4  ;;  %p550_p2 = pneg %p735_p12  ;;  %s547_s6 = int_to_ptr.hbm [resolvable:$true] %s546_s6 }
  0x15   : > { %s548_s7 = scalar_lea.hbm %s547_s6, 32  ;;  %s553_s16 = scalar_lea.hbm %s826_s0, 128 }
  0x16   : > { %p549_p1 = scmp.ne.s32.totalorder %s547_s6, %s548_s7  ;;  %p554_p5 = scmp.lt.s32.totalorder %s547_s6, %s826_s0 }
  0x17   : > { %p555_p7 = scmp.lt.s32.totalorder %s553_s16, %s548_s7 }
  0x18   : > { %p551_p3 = pnand %p550_p2, %p549_p1 }
  0x19   : > { %p556_p8 = por %p555_p7, %p554_p5 }
  0x1a   : > { %p552_p4 = pneg %p551_p3 }
  0x1c   : > { %p557_p9 = pnand %p556_p8, %p552_p4 }
  0x1e   : > { %560 = shalt.err (!%p557_p9)
}
  0x1f   : > { %s644_s23 = smov 128   ;;  %s645_s24 = smov 8  }
  0x20   : > { %495 = dma.hbm_to_vmem [thread:$0]  (!%p735_p12), %s124_s29, 512, %s126_s3, %s113_s5, %s644_s23, %s644_s23, %s645_s24  }
  0x21   : > { %p134_p1 = pnand %p475_p13, %p133_p0 }
  0x22   : > { %s756_s25 = sand.u32 (!%p134_p1), 1, %s634_s10  }
  0x23   : > { %137 = sbr.rel (%p134_p1) target bundleno = 368 (0x170), region = 28  ;;  %s476_s26 = sshll.u32 (!%p134_p1), %s756_s25, 5 }
  0x24   : > { %s140_s27 = scalar_lea.sflag (!%p134_p1), [#allocation5], %s756_s25  ;;  %s143_s28 = scalar_lea.vmem (!%p134_p1), [#allocation4], %s476_s26 }
  0x28   : > { %621 = dma.done.wait (%p714_p6), %s140_s27, 512  }
  0x29   : > { %623 = vsyncadd (%p714_p6), %s140_s27, 4294966784  ;;  %vm167_vm0 = vcmask 23552   ;;  %vm172_vm1 = vcmask 179352   ;;  %v646_v0 = vmov 0.0   ;;  %v184_v1 = vld [vmem:[%s143_s28 + $0x10] sm:$0xff]  ;;  %v182_v2 = vld [vmem:[%s143_s28] sm:$0xff] }
  0x2a   : > { %170 = vst.msk [vmem:[#allocation2 + $0x10] sm:$0xff] %vm167_vm0, %v646_v0  ;;  %s647_s20 = smov 3   ;;  %v185_v3 = vld [vmem:[%s143_s28 + $0x18] sm:$0xff]  ;;  %v183_v4 = vld [vmem:[%s143_s28 + $0x8] sm:$0xff]  ;;  %vm202_vm2 = vcmask 154648   ;;  %s648_s29 = smov 127  }
  0x2b   : > { %175 = vst.msk [vmem:[#allocation2 + $0x10] sm:$0xff] %vm172_vm1, %v646_v0  ;;  %194 = vrot.lane.b32.xlu1 %v184_v1, %s647_s20  ;;  %190 = vrot.lane.b32.xlu0 %v182_v2, %s647_s20  ;;  %s649_s30 = smov 126   ;;  %s650_s3 = smov 125   ;;  %vm177_vm3 = vcmask 124928   ;;  %vm311_vm4 = vcmask 130048  }
  0x2c   : > { %168 = vst.msk [vmem:[#allocation2] sm:$0xff] %vm167_vm0, %v646_v0  ;;  %s651_s4 = smov 124   ;;  %s652_s5 = smov 123  }
  0x2d   : > { %169 = vst.msk [vmem:[#allocation2 + $0x8] sm:$0xff] %vm167_vm0, %v646_v0  ;;  %s653_s6 = smov 122   ;;  %s487_s14 = sshll.u32 %s692_s13, 5 }
  0x2e   : > { %171 = vst.msk [vmem:[#allocation2 + $0x18] sm:$0xff] %vm167_vm0, %v646_v0  ;;  %s391_s19 = scalar_lea.hbm %s828_s2, %s487_s14  ;;  %s164_s13 = scalar_lea.vmem [#allocation7], %s476_s26 }
  0x2f   : > { %173 = vst.msk [vmem:[#allocation2] sm:$0xff] %vm172_vm1, %v646_v0  ;;  %s392_s27 = sshll.u32 %s164_s13, 4  ;;  %s394_s28 = sshll.u32 %s391_s19, 4  ;;  %s393_s27 = int_to_ptr.vmem [resolvable:$true] %s392_s27  ;;  %s395_s28 = int_to_ptr.hbm [resolvable:$true] %s394_s28 }
  0x30   : > { %174 = vst.msk [vmem:[#allocation2 + $0x8] sm:$0xff] %vm172_vm1, %v646_v0  ;;  %s379_s26 = scalar_lea.sflag [#allocation6], %s756_s25 }
  0x31   : > { %176 = vst.msk [vmem:[#allocation2 + $0x18] sm:$0xff] %vm172_vm1, %v646_v0 }
  0x32   : > { %179 = vst.msk [vmem:[#allocation3 + $0x18] sm:$0x7] %vm177_vm3, %v646_v0 }
  0x33   : > { %196 = vrot.lane.b32.xlu1 %v185_v3, %s647_s20  ;;  %192 = vrot.lane.b32.xlu0 %v183_v4, %s647_s20  ;;  %178 = vst.msk [vmem:[#allocation3] sm:$0x7] %vm177_vm3, %v646_v0  ;;  %s590_s20 = sshra.s32 %s395_s28, 4  ;;  %s591_s20 = int_to_ptr.hbm [resolvable:$true] %s590_s20 }
  0x34   : > { %180 = vst.msk [vmem:[#allocation3 + $0x13] sm:$0x7] %vm177_vm3, %v646_v0  ;;  %p597_p0 = scmp.lt.s32.totalorder %s591_s20, %s828_s2 }
  0x35   : > { %181 = vst.msk [vmem:[#allocation3 + $0x2b] sm:$0x7] %vm177_vm3, %v646_v0 }
  0x9d   : > { %v195_v5 = vpop.permute.xlu1 %194  ;;  %v191_v6 = vpop.permute.xlu0 %190 }
  0x9e   : > { %205 = vst.msk [vmem:[#allocation2 + $0x10] sm:$0xff] %vm202_vm2, %v195_v5 }
  0x9f   : > { %203 = vst.msk [vmem:[#allocation2] sm:$0xff] %vm202_vm2, %v191_v6 }
  0xa5   : > { %v197_v7 = vpop.permute.xlu1 %196  ;;  %v193_v8 = vpop.permute.xlu0 %192  ;;  %v209_v9 = vld [vmem:[#allocation2 + $0x10] sm:$0xff] }
  0xa6   : > { %206 = vst.msk [vmem:[#allocation2 + $0x18] sm:$0xff] %vm202_vm2, %v197_v7  ;;  %219 = vrot.lane.b32.xlu0 %v209_v9, %s648_s29  ;;  %v207_v10 = vld [vmem:[#allocation2] sm:$0xff] }
  0xa7   : > { %204 = vst.msk [vmem:[#allocation2 + $0x8] sm:$0xff] %vm202_vm2, %v193_v8  ;;  %215 = vrot.lane.b32.xlu2 %v207_v10, %s648_s29 }
  0xad   : > { %v210_v11 = vld [vmem:[#allocation2 + $0x18] sm:$0xff] }
  0xae   : > { %221 = vrot.lane.b32.xlu1 %v210_v11, %s648_s29  ;;  %v208_v12 = vld [vmem:[#allocation2 + $0x8] sm:$0xff] }
  0xaf   : > { %233 = vrot.lane.b32.xlu0 %v208_v12, %s649_s30  ;;  %217 = vrot.lane.b32.xlu2 %v208_v12, %s648_s29  ;;  %s592_s29 = scalar_lea.hbm %s591_s20, 32 }
  0xb0   : > { %p593_p6 = scmp.ne.s32.totalorder %s591_s20, %s592_s29 }
  0xb2   : > { %p594_p12 = pnand %p593_p6, %p720_p10 }
  0xb4   : > { %p595_p13 = pneg %p594_p12 }
  0xb6   : > { %235 = vrot.lane.b32.xlu1 %v209_v9, %s649_s30 }
  0xb7   : > { %247 = vrot.lane.b32.xlu0 %v207_v10, %s650_s3  ;;  %231 = vrot.lane.b32.xlu2 %v207_v10, %s649_s30 }
  0xbe   : > { %249 = vrot.lane.b32.xlu1 %v208_v12, %s650_s3 }
  0xbf   : > { %253 = vrot.lane.b32.xlu0 %v210_v11, %s650_s3  ;;  %237 = vrot.lane.b32.xlu2 %v210_v11, %s649_s30 }
  0xc6   : > { %263 = vrot.lane.b32.xlu1 %v207_v10, %s651_s4 }
  0xc7   : > { %267 = vrot.lane.b32.xlu0 %v209_v9, %s651_s4  ;;  %251 = vrot.lane.b32.xlu2 %v209_v9, %s650_s3 }
  0xce   : > { %269 = vrot.lane.b32.xlu1 %v210_v11, %s651_s4 }
  0xcf   : > { %281 = vrot.lane.b32.xlu0 %v208_v12, %s652_s5  ;;  %265 = vrot.lane.b32.xlu2 %v208_v12, %s651_s4  ;;  %s596_s4 = scalar_lea.hbm %s828_s2, 128 }
  0xd0   : > { %p598_p2 = scmp.lt.s32.totalorder %s596_s4, %s592_s29 }
  0xd2   : > { %p599_p3 = por %p598_p2, %p597_p0 }
  0xd4   : > { %p600_p4 = pnand %p599_p3, %p595_p13 }
  0xd6   : > { %283 = vrot.lane.b32.xlu1 %v209_v9, %s652_s5 }
  0xd7   : > { %295 = vrot.lane.b32.xlu0 %v207_v10, %s653_s6  ;;  %279 = vrot.lane.b32.xlu2 %v207_v10, %s652_s5 }
  0xde   : > { %297 = vrot.lane.b32.xlu1 %v208_v12, %s653_s6 }
  0xdf   : > { %301 = vrot.lane.b32.xlu0 %v210_v11, %s653_s6  ;;  %285 = vrot.lane.b32.xlu2 %v210_v11, %s652_s5 }
  0xe7   : > { %299 = vrot.lane.b32.xlu2 %v209_v9, %s653_s6 }
 0x101   : > { %v216_v13 = vpop.permute.xlu2 %215 }
 0x102   : > { %v227_v29 = vadd.f32 %v216_v13, %v207_v10 }
 0x109   : > { %v218_v14 = vpop.permute.xlu2 %217 }
 0x10a   : > { %v228_v39 = vadd.f32 %v218_v14, %v208_v12 }
 0x111   : > { %v232_v15 = vpop.permute.xlu2 %231 }
 0x112   : > { %v243_v31 = vadd.f32 %v232_v15, %v227_v29  ;;  %v368_v29 = vld [vmem:[%s827_s1] sm:$0xff] }
 0x118   : > { %v220_v16 = vpop.permute.xlu0 %219 }
 0x119   : > { %v238_v17 = vpop.permute.xlu2 %237  ;;  %v229_v30 = vadd.f32 %v220_v16, %v209_v9 }
 0x120   : > { %v222_v18 = vpop.permute.xlu1 %221 }
 0x121   : > { %v234_v19 = vpop.permute.xlu0 %233  ;;  %v252_v20 = vpop.permute.xlu2 %251  ;;  %v230_v37 = vadd.f32 %v222_v18, %v210_v11 }
 0x122   : > { %v244_v41 = vadd.f32 %v234_v19, %v228_v39 }
 0x123   : > { %v246_v43 = vadd.f32 %v238_v17, %v230_v37 }
 0x128   : > { %v236_v21 = vpop.permute.xlu1 %235 }
 0x129   : > { %v248_v22 = vpop.permute.xlu0 %247  ;;  %v266_v23 = vpop.permute.xlu2 %265  ;;  %v245_v34 = vadd.f32 %v236_v21, %v229_v30 }
 0x12a   : > { %v259_v36 = vadd.f32 %v248_v22, %v243_v31 }
 0x12b   : > { %v261_v40 = vadd.f32 %v252_v20, %v245_v34 }
 0x130   : > { %v250_v24 = vpop.permute.xlu1 %249 }
 0x131   : > { %v254_v25 = vpop.permute.xlu0 %253  ;;  %v280_v26 = vpop.permute.xlu2 %279  ;;  %v260_v46 = vadd.f32 %v250_v24, %v244_v41 }
 0x132   : > { %v262_v49 = vadd.f32 %v254_v25, %v246_v43 }
 0x133   : > { %v276_v54 = vadd.f32 %v266_v23, %v260_v46  ;;  %v369_v46 = vld [vmem:[%s827_s1 + $0x8] sm:$0xff] }
 0x138   : > { %v264_v27 = vpop.permute.xlu1 %263 }
 0x139   : > { %v268_v28 = vpop.permute.xlu0 %267  ;;  %v286_v32 = vpop.permute.xlu2 %285  ;;  %v275_v38 = vadd.f32 %v264_v27, %v259_v36 }
 0x13a   : > { %v277_v42 = vadd.f32 %v268_v28, %v261_v40 }
 0x13b   : > { %v291_v45 = vadd.f32 %v280_v26, %v275_v38 }
 0x140   : > { %v270_v33 = vpop.permute.xlu1 %269 }
 0x141   : > { %v282_v35 = vpop.permute.xlu0 %281  ;;  %v300_v50 = vpop.permute.xlu2 %299  ;;  %v278_v53 = vadd.f32 %v270_v33, %v262_v49 }
 0x142   : > { %v292_v55 = vadd.f32 %v282_v35, %v276_v54 }
 0x143   : > { %v294_v57 = vadd.f32 %v286_v32, %v278_v53 }
 0x148   : > { %v284_v44 = vpop.permute.xlu1 %283 }
 0x149   : > { %v293_v47 = vadd.f32 %v284_v44, %v277_v42  ;;  %v296_v48 = vpop.permute.xlu0 %295 }
 0x14a   : > { %v307_v51 = vadd.f32 %v296_v48, %v291_v45 }
 0x14b   : > { %v309_v52 = vadd.f32 %v300_v50, %v293_v47 }
 0x14c   : > { %312 = vst.msk [vmem:[#allocation3 + $0x3] sm:$0xff] %vm311_vm4, %v307_v51 }
 0x14d   : > { %314 = vst.msk [vmem:[#allocation3 + $0x1b] sm:$0xff] %vm311_vm4, %v309_v52 }
 0x150   : > { %v298_v56 = vpop.permute.xlu1 %297 }
 0x151   : > { %v308_v58 = vadd.f32 %v298_v56, %v292_v55  ;;  %v302_v59 = vpop.permute.xlu0 %301 }
 0x152   : > { %v310_v60 = vadd.f32 %v302_v59, %v294_v57 }
 0x153   : > { %v316_v61 = vld [vmem:[#allocation3] sm:$0xff]  ;;  %313 = vst.msk [vmem:[#allocation3 + $0xb] sm:$0xff] %vm311_vm4, %v308_v58 }
 0x154   : > { %v320_v62 = vld [vmem:[#allocation3 + $0x1] sm:$0xff]  ;;  %v318_v63 = vld [vmem:[#allocation3 + $0x18] sm:$0xff]  ;;  %315 = vst.msk [vmem:[#allocation3 + $0x23] sm:$0xff] %vm311_vm4, %v310_v60 }
 0x155   : > { %v322_v0 = vld [vmem:[#allocation3 + $0x19] sm:$0xff]  ;;  %v324_v1 = vadd.f32 %v320_v62, %v316_v61  ;;  %v328_v3 = vld [vmem:[#allocation3 + $0x2] sm:$0xff] }
 0x156   : > { %v326_v2 = vadd.f32 %v322_v0, %v318_v63  ;;  %v330_v4 = vld [vmem:[#allocation3 + $0x1a] sm:$0xff]  ;;  %v336_v7 = vld [vmem:[#allocation3 + $0x3] sm:$0xff] }
 0x157   : > { %v332_v5 = vadd.f32 %v328_v3, %v324_v1  ;;  %v338_v8 = vld [vmem:[#allocation3 + $0x1b] sm:$0xff] }
 0x158   : > { %v334_v6 = vadd.f32 %v330_v4, %v326_v2 }
 0x159   : > { %v340_v9 = vadd.f32 %v336_v7, %v332_v5 }
 0x15a   : > { %v317_v10 = vld [vmem:[#allocation3 + $0x8] sm:$0xff]  ;;  %v342_v14 = vadd.f32 %v338_v8, %v334_v6 }
 0x15b   : > { %v321_v11 = vld [vmem:[#allocation3 + $0x9] sm:$0xff]  ;;  %v319_v17 = vld [vmem:[#allocation3 + $0x20] sm:$0xff] }
 0x15c   : > { %v325_v12 = vadd.f32 %v321_v11, %v317_v10  ;;  %v344_v13 = vld [vmem:[#allocation3 + $0x4] sm:$0xff]  ;;  %v346_v23 = vld [vmem:[#allocation3 + $0x1c] sm:$0xff]  ;;  %v345_v30 = vld [vmem:[#allocation3 + $0xc] sm:$0xff] }
 0x15d   : > { %v329_v15 = vld [vmem:[#allocation3 + $0xa] sm:$0xff]  ;;  %v348_v16 = vadd.f32 %v344_v13, %v340_v9  ;;  %v323_v20 = vld [vmem:[#allocation3 + $0x21] sm:$0xff]  ;;  %v350_v27 = vadd.f32 %v346_v23, %v342_v14 }
 0x15e   : > { %v333_v18 = vadd.f32 %v329_v15, %v325_v12  ;;  %v352_v19 = vld [vmem:[#allocation3 + $0x5] sm:$0xff]  ;;  %v327_v22 = vadd.f32 %v323_v20, %v319_v17  ;;  %v354_v32 = vld [vmem:[#allocation3 + $0x1d] sm:$0xff]  ;;  %v353_v37 = vld [vmem:[#allocation3 + $0xd] sm:$0xff] }
 0x15f   : > { %v337_v21 = vld [vmem:[#allocation3 + $0xb] sm:$0xff]  ;;  %v356_v24 = vadd.f32 %v352_v19, %v348_v16  ;;  %v331_v26 = vld [vmem:[#allocation3 + $0x22] sm:$0xff]  ;;  %v358_v36 = vadd.f32 %v354_v32, %v350_v27 }
 0x160   : > { %v341_v25 = vadd.f32 %v337_v21, %v333_v18  ;;  %v360_v28 = vld [vmem:[#allocation3 + $0x6] sm:$0xff]  ;;  %v335_v31 = vadd.f32 %v331_v26, %v327_v22  ;;  %v362_v39 = vld [vmem:[#allocation3 + $0x1e] sm:$0xff]  ;;  %v361_v45 = vld [vmem:[#allocation3 + $0xe] sm:$0xff] }
 0x161   : > { %v364_v33 = vadd.f32 %v360_v28, %v356_v24  ;;  %v339_v35 = vld [vmem:[#allocation3 + $0x23] sm:$0xff]  ;;  %v366_v43 = vadd.f32 %v362_v39, %v358_v36 }
 0x162   : > { %v349_v34 = vadd.f32 %v345_v30, %v341_v25  ;;  %v343_v38 = vadd.f32 %v339_v35, %v335_v31  ;;  %v347_v41 = vld [vmem:[#allocation3 + $0x24] sm:$0xff] }
 0x163   : > { %v370_v40 = vmul.f32 %v368_v29, %v364_v33  ;;  %v355_v47 = vld [vmem:[#allocation3 + $0x25] sm:$0xff]  ;;  %v372_v49 = vmul.f32 %v368_v29, %v366_v43 }
 0x164   : > { %v357_v42 = vadd.f32 %v353_v37, %v349_v34  ;;  %v351_v44 = vadd.f32 %v347_v41, %v343_v38  ;;  %v363_v51 = vld [vmem:[#allocation3 + $0x26] sm:$0xff] }
 0x165   : > { %374 = vst.msk [vmem:[%s164_s13] sm:$0xff] %vm311_vm4, %v370_v40 }
 0x166   : > { %v365_v48 = vadd.f32 %v361_v45, %v357_v42  ;;  %v359_v50 = vadd.f32 %v355_v47, %v351_v44  ;;  %376 = vst.msk [vmem:[%s164_s13 + $0x10] sm:$0xff] %vm311_vm4, %v372_v49 }
 0x168   : > { %v371_v52 = vmul.f32 %v369_v46, %v365_v48  ;;  %v367_v53 = vadd.f32 %v363_v51, %v359_v50 }
 0x16a   : > { %375 = vst.msk [vmem:[%s164_s13 + $0x8] sm:$0xff] %vm311_vm4, %v371_v52  ;;  %v373_v54 = vmul.f32 %v369_v46, %v367_v53 }
 0x16c   : > { %377 = vst.msk [vmem:[%s164_s13 + $0x18] sm:$0xff] %vm311_vm4, %v373_v54 }
 0x16d   : > { %603 = shalt.err (!%p600_p4)
}
 0x16e   : > { %s654_s25 = smov 128   ;;  %s655_s7 = smov 8  }
 0x16f   : > { %490 = dma.vmem_to_hbm [thread:$0]  (%p720_p10), %s393_s27, 512, %s395_s28, %s379_s26, %s654_s25, %s654_s25, %s655_s7  }
 0x170 PF: > { %p501_p5 = scmp.ge.s32.totalorder %s642_s12, 2  ;;  %s409_s8 = sand.u32 1, %s630_s9  }
 0x171   : > { %s410_s14 = scalar_lea.sflag [#allocation6], %s409_s8 }
 0x172   : > { %p497_p7 = pnand %p501_p5, %p724_p11 }
 0x174   : > { %p498_p8 = pneg %p497_p7 }
 0x176   : > { %625 = dma.done.wait (%p498_p8), %s410_s14, 512  }
 0x177   : > { %627 = vsyncadd (%p498_p8), %s410_s14, 4294966784  ;;  %p15_p9 = scmp.ge.s32.totalorder %s696_s15, 6   ;;  %s834_s9 = smov %s634_s10 }
 0x178   : > { %s835_s10 = smov %s638_s11  ;;  %s836_s11 = smov %s708_s18 }
 0x179   : > { %s837_s12 = smov %s696_s15  ;;  %17 = sbr.rel (!%p15_p9) target bundleno = 5 (0x5), region = 73 }
 0x17e   :  { %416 = vsyncpa [#allocation5], 1 }
 0x17f   :  { %418 = vsyncpa [#allocation5 + $0x1], 1 }
 0x180   :  { %419 = vsyncpa [#allocation6], 1 }
 0x181   :  { %421 = vsyncpa [#allocation6 + $0x1], 1 }

</bundles_post_ra>
